<compile_context>
chip_gen: v7x
topology: tpu7x:2x2x1
jax: 0.10.0
libtpu: 0.0.40
codegen_flags: <defaults>
</compile_context>

<pallas_src>
import jax
import jax.numpy as jnp
from jax import lax
from jax.experimental import pallas as pl
from jax.experimental.pallas import tpu as pltpu

_INV_SQRT2 = 1.0 / 1.41421      # matches the PyTorch module's constant exactly
_TANH_C0 = 0.79788456
_TANH_C1 = 0.044715


def _erf_approx(z):
    """Abramowitz & Stegun 7.1.26 rational approximation of erf (|err|<=1.5e-7).

    Used because lax.erf has no guaranteed Mosaic lowering; this uses only
    cmp/select/mul/add (VPU) and one exp (EUP) per element.
    """
    p = 0.3275911
    a1, a2, a3, a4, a5 = (0.254829592, -0.284496736, 1.421413741,
                          -1.453152027, 1.061405429)
    s = jnp.where(z >= 0.0, 1.0, -1.0)
    za = z * s
    t = 1.0 / (1.0 + p * za)
    poly = ((((a5 * t + a4) * t + a3) * t + a2) * t + a1) * t
    return s * (1.0 - poly * jnp.exp(-za * za))


def _gelu_exact_kernel(x_ref, o_ref):
    x = x_ref[...].astype(jnp.float32)
    y = x * 0.5 * (1.0 + _erf_approx(x * _INV_SQRT2))
    o_ref[...] = y.astype(o_ref.dtype)


def _gelu_tanh_kernel(x_ref, o_ref):
    x = x_ref[...].astype(jnp.float32)
    inner = _TANH_C0 * x * (1.0 + _TANH_C1 * x * x)
    y = x * 0.5 * (1.0 + jnp.tanh(inner))
    o_ref[...] = y.astype(o_ref.dtype)


def gelu(x: jax.Array, approximate: str = "none",
         *, block_bytes: int = 2 * 1024 * 1024) -> jax.Array:
    """Forward pass of the PyTorch GELU module (elementwise, any shape)."""
    if approximate == "none":
        kernel = _gelu_exact_kernel
    elif approximate == "tanh":
        kernel = _gelu_tanh_kernel
    else:
        raise ValueError("Approximate method not supported")

    orig_shape = x.shape
    dtype = x.dtype
    n = x.size

    LANES = 128
    GRANULE = 8 * LANES  # (8,128) tile granule = 1024 elements

    # Minimal padding, only when the flat size is not (8,128)-aligned;
    # the aligned fast path adds zero extra HBM passes.
    n_pad = pl.cdiv(n, GRANULE) * GRANULE
    flat = x.reshape(-1)
    if n_pad != n:
        flat = jnp.pad(flat, (0, n_pad - n))

    # Lane-dense 2-D slab: wide (1024) last dim when possible (short grid),
    # fall back to 128 lanes for small / odd sizes.
    L = 1024 if n_pad % (8 * 1024) == 0 else LANES
    R = n_pad // L                      # multiple of 8 by construction
    x2d = flat.reshape(R, L)

    # ~block_bytes per block; tile_rows must be a multiple of 8 dividing R
    # (or equal to R when the whole slab fits in one block).
    itemsize = jnp.dtype(dtype).itemsize
    target_rows = max(8, (block_bytes // (L * itemsize)) // 8 * 8)
    if R <= target_rows:
        tile_rows = R
    else:
        tile_rows = 8
        for t in range(target_rows, 7, -8):
            if R % t == 0:
                tile_rows = t
                break

    grid = (R // tile_rows,)

    out2d = pl.pallas_call(
        kernel,
        out_shape=jax.ShapeDtypeStruct((R, L), dtype),
        grid_spec=pltpu.PrefetchScalarGridSpec(
            num_scalar_prefetch=0,
            grid=grid,
            in_specs=[pl.BlockSpec((tile_rows, L), lambda i: (i, 0))],
            out_specs=pl.BlockSpec((tile_rows, L), lambda i: (i, 0)),
        ),
        compiler_params=pltpu.CompilerParams(
            dimension_semantics=("parallel",),
        ),
    )(x2d)

    out = out2d.reshape(-1)
    if n_pad != n:
        out = out[:n]
    return out.reshape(orig_shape)


if __name__ == "__main__":
    key = jax.random.PRNGKey(0)
    # NCHW input like the PyTorch module would see: batch=2, channels=4, 16x16.
    x = jax.random.normal(key, (2, 4, 16, 16), dtype=jnp.float32) * 3.0

    # Default branch: approximate='none'  ->  x * 0.5 * (1 + erf(x / 1.41421))
    y = gelu(x)
    jax.block_until_ready(y)
    y_ref = x * 0.5 * (1.0 + lax.erf(x / 1.41421))
    assert y.shape == x.shape and y.dtype == x.dtype
    assert jnp.allclose(y, y_ref, rtol=1e-5, atol=1e-5), "exact-GELU mismatch"

    # 'tanh' branch.
    y_t = gelu(x, approximate="tanh")
    jax.block_until_ready(y_t)
    y_t_ref = x * 0.5 * (1.0 + jnp.tanh(0.79788456 * x * (1.0 + 0.044715 * x * x)))
    assert jnp.allclose(y_t, y_t_ref, rtol=1e-5, atol=1e-5), "tanh-GELU mismatch"

    print("KERNEL_OK")
</pallas_src>

<mosaic_0001>
module attributes {stable_mosaic.version = 11 : i64} {
  func.func @_gelu_exact_kernel(%arg0: i32, %arg1: memref<16x128xf32, #tpu.memory_space<vmem>>, %arg2: memref<16x128xf32, #tpu.memory_space<vmem>>) attributes {dimension_semantics = [#tpu.dimension_semantics<parallel>], iteration_bounds = array<i64: 1>, scalar_prefetch = 0 : i64, scratch_operands = 0 : i64, tpu.core_type = #tpu.core_type<tc>, window_params = [{transform_indices = @transform_0, window_bounds = array<i64: 16, 128>}, {transform_indices = @transform_1, window_bounds = array<i64: 16, 128>}]} {
    %c0 = arith.constant 0 : index
    %c0_0 = arith.constant 0 : index
    %0 = vector.load %arg1[%c0, %c0_0] : memref<16x128xf32, #tpu.memory_space<vmem>>, vector<16x128xf32>
    %cst = arith.constant 5.000000e-01 : f32
    %1 = vector.broadcast %cst : f32 to vector<16x128xf32>
    %2 = arith.mulf %0, %1 : vector<16x128xf32>
    %cst_1 = arith.constant 0.707108557 : f32
    %3 = vector.broadcast %cst_1 : f32 to vector<16x128xf32>
    %4 = arith.mulf %0, %3 : vector<16x128xf32>
    %cst_2 = arith.constant 0.000000e+00 : f32
    %5 = vector.broadcast %cst_2 : f32 to vector<16x128xf32>
    %6 = arith.cmpf oge, %4, %5 : vector<16x128xf32>
    %cst_3 = arith.constant 1.000000e+00 : f32
    %cst_4 = arith.constant -1.000000e+00 : f32
    %7 = vector.broadcast %cst_3 : f32 to vector<16x128xf32>
    %8 = vector.broadcast %cst_4 : f32 to vector<16x128xf32>
    %9 = arith.select %6, %7, %8 : vector<16x128xi1>, vector<16x128xf32>
    %10 = arith.mulf %4, %9 : vector<16x128xf32>
    %cst_5 = arith.constant 0.327591091 : f32
    %11 = vector.broadcast %cst_5 : f32 to vector<16x128xf32>
    %12 = arith.mulf %11, %10 : vector<16x128xf32>
    %cst_6 = arith.constant 1.000000e+00 : f32
    %13 = vector.broadcast %cst_6 : f32 to vector<16x128xf32>
    %14 = arith.addf %13, %12 : vector<16x128xf32>
    %cst_7 = arith.constant 1.000000e+00 : f32
    %15 = vector.broadcast %cst_7 : f32 to vector<16x128xf32>
    %16 = arith.divf %15, %14 : vector<16x128xf32>
    %cst_8 = arith.constant 1.06140542 : f32
    %17 = vector.broadcast %cst_8 : f32 to vector<16x128xf32>
    %18 = arith.mulf %17, %16 : vector<16x128xf32>
    %cst_9 = arith.constant -1.45315206 : f32
    %19 = vector.broadcast %cst_9 : f32 to vector<16x128xf32>
    %20 = arith.addf %18, %19 : vector<16x128xf32>
    %21 = arith.mulf %20, %16 : vector<16x128xf32>
    %cst_10 = arith.constant 1.42141378 : f32
    %22 = vector.broadcast %cst_10 : f32 to vector<16x128xf32>
    %23 = arith.addf %21, %22 : vector<16x128xf32>
    %24 = arith.mulf %23, %16 : vector<16x128xf32>
    %cst_11 = arith.constant -0.284496725 : f32
    %25 = vector.broadcast %cst_11 : f32 to vector<16x128xf32>
    %26 = arith.addf %24, %25 : vector<16x128xf32>
    %27 = arith.mulf %26, %16 : vector<16x128xf32>
    %cst_12 = arith.constant 0.254829586 : f32
    %28 = vector.broadcast %cst_12 : f32 to vector<16x128xf32>
    %29 = arith.addf %27, %28 : vector<16x128xf32>
    %30 = arith.mulf %29, %16 : vector<16x128xf32>
    %cst_13 = arith.constant 0.000000e+00 : f32
    %31 = vector.broadcast %cst_13 : f32 to vector<16x128xf32>
    %32 = arith.subf %31, %10 : vector<16x128xf32>
    %33 = arith.mulf %32, %10 : vector<16x128xf32>
    %34 = math.exp %33 : vector<16x128xf32>
    %35 = arith.mulf %30, %34 : vector<16x128xf32>
    %cst_14 = arith.constant 1.000000e+00 : f32
    %36 = vector.broadcast %cst_14 : f32 to vector<16x128xf32>
    %37 = arith.subf %36, %35 : vector<16x128xf32>
    %38 = arith.mulf %9, %37 : vector<16x128xf32>
    %cst_15 = arith.constant 1.000000e+00 : f32
    %39 = vector.broadcast %cst_15 : f32 to vector<16x128xf32>
    %40 = arith.addf %39, %38 : vector<16x128xf32>
    %41 = arith.mulf %2, %40 : vector<16x128xf32>
    %c0_16 = arith.constant 0 : index
    %c0_17 = arith.constant 0 : index
    %42 = vector.load %arg2[%c0_16, %c0_17] : memref<16x128xf32, #tpu.memory_space<vmem>>, vector<16x128xf32>
    tpu.vector_store %arg2[%c0_16, %c0_17], %41 {strides = array<i32>} : memref<16x128xf32, #tpu.memory_space<vmem>>, vector<16x128xf32>,
    return
  }
  func.func @transform_0(%arg0: i32) -> (i32, i32) {
    %c0_i32 = arith.constant 0 : i32
    %c0_i32_0 = arith.constant 0 : i32
    return %arg0, %c0_i32 : i32, i32
  }
  func.func @transform_1(%arg0: i32) -> (i32, i32) {
    %c0_i32 = arith.constant 0 : i32
    %c0_i32_0 = arith.constant 0 : i32
    return %arg0, %c0_i32 : i32, i32
  }
}

</mosaic_0001>

<bundles_post_ra>
// kernel: tpu_custom_call.1
= control target key start
LH: loop header
LB: loop body
LE: loop exit
PB: predicated region body
PF: predicated region fallthrough
CT: control target
= control target key end

     0   :  { %6 = vsyncpa [#allocation3], 0  ;;  %s204_s0 = inlined_call_operand.hbm [shape: f32[16,128], index: 0, kind: input, shape index: {}]   ;;  %s205_s1 = inlined_call_operand.hbm [shape: f32[16,128], index: 1, kind: output, shape index: {}]  }
   0x1   :  { %7 = vsyncpa [#allocation4], 0  ;;  %s159_s6 = smov [#allocation2]   ;;  %s111_s10 = scalar_lea.hbm %s204_s0, 256 }
   0x2   :  { %s13_s7 = sshll.u32 %s159_s6, 4  ;;  %p112_p0 = scmp.ne.s32.totalorder %s204_s0, %s111_s10  ;;  %s14_s7 = int_to_ptr.vmem [resolvable:$true] %s13_s7 }
   0x3   :  { %p115_p1 = scmp.lt.u32.totalorder %s111_s10, %s204_s0 }
   0x5   :  { %p117_p2 = pnand %p115_p1, %p112_p0 }
   0x7   :  { %120 = shalt.err (!%p117_p2)
}
   0x8   :  { %s121_s15 = scalar_lea.vmem %s14_s7, 256  ;;  %p126_p4 = scmp.lt.s32.totalorder %s14_s7, %s14_s7 }
   0x9   :  { %p122_p3 = scmp.ne.s32.totalorder %s14_s7, %s121_s15  ;;  %p127_p5 = scmp.lt.s32.totalorder %s121_s15, %s121_s15 }
   0xb   :  { %p128_p6 = por %p127_p5, %p126_p4 }
   0xd   :  { %p129_p7 = pnand %p128_p6, %p122_p3 }
   0xf   :  { %132 = shalt.err (!%p129_p7)
}
  0x10   :  { %s160_s16 = smov 128   ;;  %s161_s17 = smov 8  }
  0x11   :  { %19 = dma.hbm_to_vmem [thread:$0]  %s204_s0, 256, %s14_s7, [#allocation3], %s160_s16, %s160_s16, %s161_s17  }
  0x12   :  { %155 = dma.done.wait [#allocation3], 256  }
  0x13   :  { %156 = vsyncadd [#allocation3], 4294967040  ;;  %v23_v0 = vld [vmem:[#allocation2] sm:$0xff]  ;;  %v24_v1 = vld [vmem:[#allocation2 + $0x8] sm:$0xff]  ;;  %v162_v4 = vmov -1.0   ;;  %s163_s0 = smov [#allocation5]  }
  0x14   :  { %v27_v2 = vmul.f32 0.70710856, %v23_v0  ;;  %v28_v3 = vmul.f32 0.70710856, %v24_v1  ;;  %v25_v45 = vmul.f32 0.5, %v23_v0  ;;  %v26_v47 = vmul.f32 0.5, %v24_v1 }
  0x15   :  { %s86_s20 = sshll.u32 %s163_s0, 4  ;;  %s87_s20 = int_to_ptr.vmem [resolvable:$true] %s86_s20 }
  0x16   :  { %vm29_vm0 = vcmp.ge.f32.partialorder %v27_v2, 0.0  ;;  %vm30_vm1 = vcmp.ge.f32.partialorder %v28_v3, 0.0  ;;  %s133_s21 = scalar_lea.vmem %s87_s20, 256  ;;  %p138_p9 = scmp.lt.s32.totalorder %s87_s20, %s87_s20 }
  0x17   :  { %v31_v5 = vsel %vm29_vm0, 1.0, %v162_v4  ;;  %v32_v6 = vsel %vm30_vm1, 1.0, %v162_v4  ;;  %p134_p8 = scmp.ne.s32.totalorder %s87_s20, %s133_s21  ;;  %p139_p10 = scmp.lt.s32.totalorder %s133_s21, %s133_s21 }
  0x18   :  { %v33_v7 = vmul.f32 %v31_v5, %v27_v2  ;;  %v34_v8 = vmul.f32 %v32_v6, %v28_v3 }
  0x19   :  { %p140_p11 = por %p139_p10, %p138_p9 }
  0x1a   :  { %v35_v9 = vmul.f32 0.3275911, %v33_v7  ;;  %v36_v10 = vmul.f32 0.3275911, %v34_v8  ;;  %v61_v13 = vsub.f32 0.0, %v33_v7  ;;  %v62_v14 = vsub.f32 0.0, %v34_v8 }
  0x1b   :  { %p141_p12 = pnand %p140_p11, %p134_p8 }
  0x1c   :  { %v37_v11 = vadd.f32 1.0, %v35_v9  ;;  %v38_v12 = vadd.f32 1.0, %v36_v10  ;;  %v63_v15 = vmul.f32 %v61_v13, %v33_v7  ;;  %v64_v16 = vmul.f32 %v62_v14, %v34_v8 }
  0x1e   :  { %103 = vrcp.f32 %v37_v11  ;;  %v65_v20 = vmul.f32 1.442695, %v63_v15  ;;  %v67_v23 = vmul.f32 1.442695, %v64_v16 }
  0x1f   :  { %105 = vrcp.f32 %v38_v12 }
  0x20   :  { %107 = vpow2.f32 %v65_v20 }
  0x21   :  { %109 = vpow2.f32 %v67_v23 }
  0x28   :  { %v104_v17 = vpop.eup %103 }
  0x29   :  { %v106_v18 = vpop.eup %105  ;;  %v43_v19 = vmul.f32 1.0614054, %v104_v17 }
  0x2a   :  { %v44_v21 = vmul.f32 1.0614054, %v106_v18  ;;  %v108_v36 = vpop.eup %107 }
  0x2b   :  { %v45_v22 = vadd.f32 -1.4531521, %v43_v19  ;;  %v110_v38 = vpop.eup %109 }
  0x2c   :  { %v46_v24 = vadd.f32 -1.4531521, %v44_v21 }
  0x2d   :  { %v47_v25 = vmul.f32 %v104_v17, %v45_v22 }
  0x2e   :  { %v48_v26 = vmul.f32 %v106_v18, %v46_v24 }
  0x2f   :  { %v49_v27 = vadd.f32 1.4214138, %v47_v25 }
  0x30   :  { %v50_v28 = vadd.f32 1.4214138, %v48_v26 }
  0x31   :  { %v51_v29 = vmul.f32 %v104_v17, %v49_v27 }
  0x32   :  { %v52_v30 = vmul.f32 %v106_v18, %v50_v28 }
  0x33   :  { %v53_v31 = vadd.f32 -0.28449672, %v51_v29 }
  0x34   :  { %v54_v32 = vadd.f32 -0.28449672, %v52_v30 }
  0x35   :  { %v55_v33 = vmul.f32 %v104_v17, %v53_v31 }
  0x36   :  { %v56_v34 = vmul.f32 %v106_v18, %v54_v32 }
  0x37   :  { %v57_v35 = vadd.f32 0.2548296, %v55_v33 }
  0x38   :  { %v58_v37 = vadd.f32 0.2548296, %v56_v34 }
  0x39   :  { %v59_v39 = vmul.f32 %v104_v17, %v57_v35 }
  0x3a   :  { %v60_v40 = vmul.f32 %v106_v18, %v58_v37 }
  0x3b   :  { %v69_v41 = vmul.f32 %v108_v36, %v59_v39 }
  0x3c   :  { %v70_v42 = vmul.f32 %v110_v38, %v60_v40 }
  0x3d   :  { %v71_v43 = vsub.f32 1.0, %v69_v41 }
  0x3e   :  { %v72_v44 = vsub.f32 1.0, %v70_v42 }
  0x3f   :  { %v73_v46 = vmul.f32 %v71_v43, %v31_v5 }
  0x40   :  { %v74_v48 = vmul.f32 %v72_v44, %v32_v6 }
  0x41   :  { %v75_v49 = vadd.f32 1.0, %v73_v46 }
  0x42   :  { %v76_v50 = vadd.f32 1.0, %v74_v48 }
  0x43   :  { %v77_v51 = vmul.f32 %v75_v49, %v25_v45 }
  0x44   :  { %v78_v52 = vmul.f32 %v76_v50, %v26_v47 }
  0x45   :  { %79 = vst [vmem:[#allocation5] sm:$0xff] %v77_v51 }
  0x46   :  { %80 = vst [vmem:[#allocation5 + $0x8] sm:$0xff] %v78_v52 }
  0x47   :  { %144 = shalt.err (!%p141_p12)
}
  0x48   :  { %s145_s24 = scalar_lea.hbm %s205_s1, 256 }
  0x49   :  { %p146_p13 = scmp.ne.s32.totalorder %s205_s1, %s145_s24  ;;  %p149_p0 = scmp.lt.u32.totalorder %s145_s24, %s205_s1 }
  0x4b   :  { %p151_p1 = pnand %p149_p0, %p146_p13 }
  0x4d   :  { %154 = shalt.err (!%p151_p1)
}
  0x4e   :  { %92 = dma.vmem_to_hbm [thread:$0]  %s87_s20, 256, %s205_s1, [#allocation4], %s160_s16, %s160_s16, %s161_s17  }
  0x4f   :  { %157 = dma.done.wait [#allocation4], 256  }
  0x50   :  { %158 = vsyncadd [#allocation4], 4294967040 }
  0x51   :  { %96 = vsyncpa [#allocation3], 1 }
  0x52   :  { %97 = vsyncpa [#allocation4], 1 }

</bundles_post_ra>
